<compile_context>
chip_gen: v7x
topology: tpu7x:2x2x1
jax: 0.10.0
libtpu: 0.0.40
codegen_flags: <defaults>
</compile_context>

<pallas_src>
import jax
import jax.numpy as jnp
from jax.experimental import pallas as pl
from jax.experimental.pallas import tpu as pltpu

LANES = 128
SUBLANES = 8


def _round_down(a, b):
    return (a // b) * b


def _device_kind():
    try:
        return jax.devices()[0].device_kind.lower()
    except Exception:
        return ""


def _bce_per_elem(x, r):
    """Numerically stable BCE-with-logits vs target z = (r > 0).float().

    max(x, 0) - x*z + log(1 + exp(-|x|)); x*z is folded into a single select.
    """
    x = x.astype(jnp.float32)
    r = r.astype(jnp.float32)
    xz = jnp.where(r > 0.0, x, 0.0)
    return jnp.maximum(x, 0.0) - xz + jnp.log1p(jnp.exp(-jnp.abs(x)))


def _bce_sum_kernel(x_ref, r_ref, out_ref, acc_ref):
    i = pl.program_id(1)  # sequential reduction axis

    @pl.when(i == 0)
    def _init():
        acc_ref[...] = jnp.zeros_like(acc_ref)

    per_elem = _bce_per_elem(x_ref[...], r_ref[...])

    # Fold the (tile_m, 128) block onto the vreg-shaped (8, 128) accumulator.
    # Shallow 8-way tree keeps the f32 add latency hidden at large tiles.
    chunks = per_elem.reshape(-1, SUBLANES, LANES)
    n = chunks.shape[0]
    if n % 8 == 0 and n > 8:
        partial = chunks.reshape(8, n // 8, SUBLANES, LANES).sum(axis=1)
        acc_ref[...] += partial.sum(axis=0)
    else:
        acc_ref[...] += chunks.sum(axis=0)

    @pl.when(i == pl.num_programs(1) - 1)
    def _finalize():
        out_ref[...] = acc_ref[...]


def loss_mask_forward(mask_logits, target_range_view, *, tile_m=None, num_parts=None):
    """BCEWithLogitsLoss(reduction='mean')(mask_logits, (range_view > 0).float())."""
    assert mask_logits.shape == target_range_view.shape
    total = mask_logits.size

    kind = _device_kind()
    if tile_m is None:
        # v5e has the smallest default scoped-VMEM; cap there per review.
        tile_m = 4096 if "v5" in kind else 8192
    if num_parts is None:
        # Megacore split only pays off on multi-TensorCore chips (v7x).
        num_parts = 2 if "v7" in kind else 1

    x_flat = mask_logits.reshape(-1)
    r_flat = target_range_view.reshape(-1)

    rows_bulk = total // LANES
    tile_cap = max(SUBLANES, _round_down(int(tile_m), SUBLANES))
    tile_m_eff = min(tile_cap, _round_down(rows_bulk, SUBLANES))  # may be 0
    total_blocks = rows_bulk // tile_m_eff if tile_m_eff else 0
    if num_parts > 1 and total_blocks < num_parts:
        num_parts = 1
    blocks_per_part = total_blocks // num_parts if total_blocks else 0
    rows_main = num_parts * blocks_per_part * tile_m_eff
    n_main = rows_main * LANES

    if rows_main > 0:
        # Static slice; when the shape divides cleanly this is the full array
        # (no copy) + a free reshape.
        x2d = x_flat[:n_main].reshape(rows_main, LANES)
        r2d = r_flat[:n_main].reshape(rows_main, LANES)

        x_tile_bytes = tile_m_eff * LANES * x2d.dtype.itemsize
        r_tile_bytes = tile_m_eff * LANES * r2d.dtype.itemsize
        vmem_needed = 2 * (x_tile_bytes + r_tile_bytes) + (1 << 20)
        # Leave margin, stay well under v7x's 64 MiB physical VMEM per TC.
        vmem_limit = int(min(max(vmem_needed + (8 << 20), 24 << 20), 56 << 20))

        cost = pl.CostEstimate(
            flops=10 * n_main,
            transcendentals=2 * n_main,
            bytes_accessed=n_main * (x2d.dtype.itemsize + r2d.dtype.itemsize)
            + num_parts * SUBLANES * LANES * 4,
        )

        bpp = blocks_per_part  # closure-captured Python int

        partials = pl.pallas_call(
            _bce_sum_kernel,
            out_shape=jax.ShapeDtypeStruct((num_parts * SUBLANES, LANES), jnp.float32),
            grid_spec=pltpu.PrefetchScalarGridSpec(
                num_scalar_prefetch=0,
                grid=(num_parts, blocks_per_part),
                in_specs=[
                    pl.BlockSpec((tile_m_eff, LANES), lambda p, i: (p * bpp + i, 0)),
                    pl.BlockSpec((tile_m_eff, LANES), lambda p, i: (p * bpp + i, 0)),
                ],
                out_specs=pl.BlockSpec((SUBLANES, LANES), lambda p, i: (p, 0)),
                scratch_shapes=[pltpu.VMEM((SUBLANES, LANES), jnp.float32)],
            ),
            compiler_params=pltpu.CompilerParams(
                dimension_semantics=("parallel", "arbitrary"),
                vmem_limit_bytes=vmem_limit,
            ),
            cost_estimate=cost,
        )(x2d, r2d)
        loss_sum = jnp.sum(partials)
    else:
        loss_sum = jnp.float32(0.0)

    # Remainder (< tile_m_eff*num_parts rows plus the <128-elem lane tail):
    # plain jnp, at most a few MiB.  Avoids any pad/copy of the bulk and any
    # masking inside the kernel's hot loop.
    if n_main < total:
        loss_sum = loss_sum + jnp.sum(_bce_per_elem(x_flat[n_main:], r_flat[n_main:]))

    return loss_sum / jnp.float32(total)


def _reference_loss(mask_logits, target_range_view):
    return jnp.mean(_bce_per_elem(mask_logits, target_range_view))


if __name__ == "__main__":
    key = jax.random.PRNGKey(0)
    k1, k2, k3, k4 = jax.random.split(key, 4)

    # (B, T, H, W) = (2, 4, 16, 16) -> 2048 elements -> (16, 128) slab,
    # exercises the pure in-kernel path (no remainder).
    B, T, H, W = 2, 4, 16, 16
    mask_logits = jax.random.normal(k1, (B, T, H, W), dtype=jnp.float32)
    rng = jax.random.uniform(k2, (B, T, H, W), dtype=jnp.float32,
                             minval=-1.0, maxval=50.0)
    target_range_view = jnp.where(rng > 0.0, rng, jnp.float32(-1.0))

    loss = jax.block_until_ready(loss_mask_forward(mask_logits, target_range_view))
    ref = _reference_loss(mask_logits, target_range_view)
    assert jnp.allclose(loss, ref, rtol=1e-5, atol=1e-6), (loss, ref)

    # Non-divisible shape: kernel handles the block-aligned bulk, the wrapper
    # sums the ragged remainder (no padding anywhere).
    ml2 = jax.random.normal(k3, (3, 5, 13, 7), dtype=jnp.float32)
    rv2 = jax.random.uniform(k4, (3, 5, 13, 7), dtype=jnp.float32,
                             minval=-1.0, maxval=10.0)
    loss2 = jax.block_until_ready(loss_mask_forward(ml2, rv2))
    ref2 = _reference_loss(ml2, rv2)
    assert jnp.allclose(loss2, ref2, rtol=1e-5, atol=1e-6), (loss2, ref2)

    print("KERNEL_OK")
</pallas_src>

<mosaic_0001>
module attributes {stable_mosaic.version = 11 : i64} {
  func.func @_bce_sum_kernel(%arg0: i32, %arg1: i32, %arg2: memref<16x128xf32, #tpu.memory_space<vmem>>, %arg3: memref<16x128xf32, #tpu.memory_space<vmem>>, %arg4: memref<8x128xf32, #tpu.memory_space<vmem>>, %arg5: memref<8x128xf32, #tpu.memory_space<vmem>>) attributes {dimension_semantics = [#tpu.dimension_semantics<parallel>, #tpu.dimension_semantics<arbitrary>], iteration_bounds = array<i64: 1, 1>, scalar_prefetch = 0 : i64, scratch_operands = 1 : i64, tpu.core_type = #tpu.core_type<tc>, window_params = [{transform_indices = @transform_0, window_bounds = array<i64: 16, 128>}, {transform_indices = @transform_1, window_bounds = array<i64: 16, 128>}, {transform_indices = @transform_2, window_bounds = array<i64: 8, 128>}]} {
    %c0_i32 = arith.constant 0 : i32
    %0 = arith.cmpi eq, %arg1, %c0_i32 : i32
    %1 = arith.extui %0 : i1 to i32
    %c0_i32_0 = arith.constant 0 : i32
    %2 = arith.cmpi ne, %1, %c0_i32_0 : i32
    scf.if %2 {
      %cst_14 = arith.constant 0.000000e+00 : f32
      %26 = vector.broadcast %cst_14 : f32 to vector<8x128xf32>
      %c0_15 = arith.constant 0 : index
      %c0_16 = arith.constant 0 : index
      %27 = vector.load %arg5[%c0_15, %c0_16] : memref<8x128xf32, #tpu.memory_space<vmem>>, vector<8x128xf32>
      tpu.vector_store %arg5[%c0_15, %c0_16], %26 {strides = array<i32>} : memref<8x128xf32, #tpu.memory_space<vmem>>, vector<8x128xf32>,
    } else {
    }
    %c0 = arith.constant 0 : index
    %c0_1 = arith.constant 0 : index
    %3 = vector.load %arg2[%c0, %c0_1] : memref<16x128xf32, #tpu.memory_space<vmem>>, vector<16x128xf32>
    %c0_2 = arith.constant 0 : index
    %c0_3 = arith.constant 0 : index
    %4 = vector.load %arg3[%c0_2, %c0_3] : memref<16x128xf32, #tpu.memory_space<vmem>>, vector<16x128xf32>
    %cst = arith.constant 0.000000e+00 : f32
    %5 = vector.broadcast %cst : f32 to vector<16x128xf32>
    %6 = arith.cmpf ogt, %4, %5 : vector<16x128xf32>
    %cst_4 = arith.constant 0.000000e+00 : f32
    %7 = vector.broadcast %cst_4 : f32 to vector<16x128xf32>
    %8 = arith.select %6, %3, %7 : vector<16x128xi1>, vector<16x128xf32>
    %cst_5 = arith.constant 0.000000e+00 : f32
    %9 = vector.broadcast %cst_5 : f32 to vector<16x128xf32>
    %10 = arith.maximumf %3, %9 : vector<16x128xf32>
    %11 = arith.subf %10, %8 : vector<16x128xf32>
    %12 = math.absf %3 : vector<16x128xf32>
    %cst_6 = arith.constant 0.000000e+00 : f32
    %13 = vector.broadcast %cst_6 : f32 to vector<16x128xf32>
    %14 = arith.subf %13, %12 : vector<16x128xf32>
    %15 = math.exp %14 : vector<16x128xf32>
    %16 = math.log1p %15 : vector<16x128xf32>
    %17 = arith.addf %11, %16 : vector<16x128xf32>
    %18 = vector.shape_cast %17 : vector<16x128xf32> to vector<2x8x128xf32>
    %c0_7 = arith.constant 0 : index
    %c0_8 = arith.constant 0 : index
    %19 = vector.load %arg5[%c0_7, %c0_8] : memref<8x128xf32, #tpu.memory_space<vmem>>, vector<8x128xf32>
    %cst_9 = arith.constant dense<0.000000e+00> : vector<8x128xf32>
    %20 = vector.multi_reduction <add>, %18, %cst_9 [0] : vector<2x8x128xf32> to vector<8x128xf32>
    %21 = arith.addf %19, %20 : vector<8x128xf32>
    %c0_10 = arith.constant 0 : index
    %c0_11 = arith.constant 0 : index
    %22 = vector.load %arg5[%c0_10, %c0_11] : memref<8x128xf32, #tpu.memory_space<vmem>>, vector<8x128xf32>
    tpu.vector_store %arg5[%c0_10, %c0_11], %21 {strides = array<i32>} : memref<8x128xf32, #tpu.memory_space<vmem>>, vector<8x128xf32>,
    %c0_i32_12 = arith.constant 0 : i32
    %23 = arith.cmpi eq, %arg1, %c0_i32_12 : i32
    %24 = arith.extui %23 : i1 to i32
    %c0_i32_13 = arith.constant 0 : i32
    %25 = arith.cmpi ne, %24, %c0_i32_13 : i32
    scf.if %25 {
      %c0_14 = arith.constant 0 : index
      %c0_15 = arith.constant 0 : index
      %26 = vector.load %arg5[%c0_14, %c0_15] : memref<8x128xf32, #tpu.memory_space<vmem>>, vector<8x128xf32>
      %c0_16 = arith.constant 0 : index
      %c0_17 = arith.constant 0 : index
      %27 = vector.load %arg4[%c0_16, %c0_17] : memref<8x128xf32, #tpu.memory_space<vmem>>, vector<8x128xf32>
      tpu.vector_store %arg4[%c0_16, %c0_17], %26 {strides = array<i32>} : memref<8x128xf32, #tpu.memory_space<vmem>>, vector<8x128xf32>,
    } else {
    }
    return
  }
  func.func @transform_0(%arg0: i32, %arg1: i32) -> (i32, i32) {
    %c1_i32 = arith.constant 1 : i32
    %0 = arith.muli %arg0, %c1_i32 : i32
    %1 = arith.addi %0, %arg1 : i32
    %c0_i32 = arith.constant 0 : i32
    %c0_i32_0 = arith.constant 0 : i32
    return %1, %c0_i32 : i32, i32
  }
  func.func @transform_1(%arg0: i32, %arg1: i32) -> (i32, i32) {
    %c1_i32 = arith.constant 1 : i32
    %0 = arith.muli %arg0, %c1_i32 : i32
    %1 = arith.addi %0, %arg1 : i32
    %c0_i32 = arith.constant 0 : i32
    %c0_i32_0 = arith.constant 0 : i32
    return %1, %c0_i32 : i32, i32
  }
  func.func @transform_2(%arg0: i32, %arg1: i32) -> (i32, i32) {
    %c0_i32 = arith.constant 0 : i32
    %c0_i32_0 = arith.constant 0 : i32
    return %arg0, %c0_i32 : i32, i32
  }
}

</mosaic_0001>

<bundles_post_ra>
// kernel: tpu_custom_call.1
= control target key start
LH: loop header
LB: loop body
LE: loop exit
PB: predicated region body
PF: predicated region fallthrough
CT: control target
= control target key end

     0   :  { %7 = vsyncpa [#allocation4], 0  ;;  %s263_s0 = inlined_call_operand.hbm [shape: f32[16,128], index: 0, kind: input, shape index: {}]   ;;  %s264_s1 = inlined_call_operand.hbm [shape: f32[16,128], index: 1, kind: input, shape index: {}]   ;;  %s265_s2 = inlined_call_operand.hbm [shape: f32[8,128], index: 2, kind: output, shape index: {}]  }
   0x1   :  { %8 = vsyncpa [#allocation7], 0 }
   0x2   :  { %9 = vsyncpa [#allocation5], 0  ;;  %s207_s9 = smov [#allocation3]   ;;  %s135_s13 = scalar_lea.hbm %s263_s0, 256 }
   0x3   :  { %s19_s10 = sshll.u32 %s207_s9, 4  ;;  %p136_p0 = scmp.ne.s32.totalorder %s263_s0, %s135_s13  ;;  %s20_s10 = int_to_ptr.vmem [resolvable:$true] %s19_s10 }
   0x4   :  { %p139_p1 = scmp.lt.u32.totalorder %s135_s13, %s263_s0 }
   0x6   :  { %p141_p2 = pnand %p139_p1, %p136_p0 }
   0x8   :  { %144 = shalt.err (!%p141_p2)
}
   0x9   :  { %s145_s18 = scalar_lea.vmem %s20_s10, 256  ;;  %p150_p4 = scmp.lt.s32.totalorder %s20_s10, %s20_s10 }
   0xa   :  { %p146_p3 = scmp.ne.s32.totalorder %s20_s10, %s145_s18  ;;  %p151_p5 = scmp.lt.s32.totalorder %s145_s18, %s145_s18 }
   0xc   :  { %p152_p6 = por %p151_p5, %p150_p4 }
   0xe   :  { %p153_p7 = pnand %p152_p6, %p146_p3 }
  0x10   :  { %156 = shalt.err (!%p153_p7)
}
  0x11   :  { %s208_s19 = smov 128   ;;  %s209_s20 = smov 8  }
  0x12   :  { %25 = dma.hbm_to_vmem [thread:$0]  %s263_s0, 256, %s20_s10, [#allocation4], %s208_s19, %s208_s19, %s209_s20  }
  0x13   :  { %s210_s23 = smov [#allocation6]   ;;  %s157_s27 = scalar_lea.hbm %s264_s1, 256 }
  0x14   :  { %s35_s24 = sshll.u32 %s210_s23, 4  ;;  %p158_p8 = scmp.ne.s32.totalorder %s264_s1, %s157_s27  ;;  %s36_s24 = int_to_ptr.vmem [resolvable:$true] %s35_s24 }
  0x15   :  { %p161_p9 = scmp.lt.u32.totalorder %s157_s27, %s264_s1 }
  0x17   :  { %p163_p10 = pnand %p161_p9, %p158_p8 }
  0x19   :  { %166 = shalt.err (!%p163_p10)
}
  0x1a   :  { %s167_s4 = scalar_lea.vmem %s36_s24, 256  ;;  %p172_p12 = scmp.lt.s32.totalorder %s36_s24, %s36_s24 }
  0x1b   :  { %p168_p11 = scmp.ne.s32.totalorder %s36_s24, %s167_s4  ;;  %p173_p13 = scmp.lt.s32.totalorder %s167_s4, %s167_s4 }
  0x1d   :  { %p174_p0 = por %p173_p13, %p172_p12 }
  0x1f   :  { %p175_p1 = pnand %p174_p0, %p168_p11 }
  0x21   :  { %178 = shalt.err (!%p175_p1)
}
  0x22   :  { %41 = dma.hbm_to_vmem [thread:$0]  %s264_s1, 256, %s36_s24, [#allocation7], %s208_s19, %s208_s19, %s209_s20  }
  0x23   :  { %201 = dma.done.wait [#allocation4], 256  }
  0x24   :  { %202 = vsyncadd [#allocation4], 4294967040 }
  0x25   :  { %203 = dma.done.wait [#allocation7], 256  }
  0x26   :  { %204 = vsyncadd [#allocation7], 4294967040  ;;  %v57_v0 = vld [vmem:[#allocation3] sm:$0xff]  ;;  %v58_v1 = vld [vmem:[#allocation3 + $0x8] sm:$0xff]  ;;  %s211_s1 = smov [#allocation8]  }
  0x27   :  { %v69_v2 = vand.u32 2147483647, %v57_v0  ;;  %v70_v3 = vand.u32 2147483647, %v58_v1  ;;  %v59_v12 = vld [vmem:[#allocation6] sm:$0xff]  ;;  %v60_v14 = vld [vmem:[#allocation6 + $0x8] sm:$0xff] }
  0x28   :  { %vm61_vm0 = vcmp.gt.f32.partialorder %v59_v12, 0.0  ;;  %vm62_vm1 = vcmp.gt.f32.partialorder %v60_v14, 0.0  ;;  %v65_v17 = vmax.f32 %v57_v0, 0.0  ;;  %v66_v21 = vmax.f32 %v58_v1, 0.0  ;;  %s112_s6 = sshll.u32 %s211_s1, 4  ;;  %s113_s6 = int_to_ptr.vmem [resolvable:$true] %s112_s6 }
  0x29   :  { %v71_v4 = vsub.f32 0.0, %v69_v2  ;;  %v72_v5 = vsub.f32 0.0, %v70_v3  ;;  %v63_v20 = vsel %vm61_vm0, %v57_v0, 0.0  ;;  %v64_v23 = vsel %vm62_vm1, %v58_v1, 0.0  ;;  %s179_s7 = scalar_lea.vmem %s113_s6, 128  ;;  %p184_p3 = scmp.lt.s32.totalorder %s113_s6, %s113_s6 }
  0x2a   :  { %v67_v26 = vsub.f32 %v65_v17, %v63_v20  ;;  %v68_v29 = vsub.f32 %v66_v21, %v64_v23  ;;  %p180_p2 = scmp.ne.s32.totalorder %s113_s6, %s179_s7  ;;  %p185_p4 = scmp.lt.s32.totalorder %s179_s7, %s179_s7 }
  0x2b   :  { %v73_v6 = vmul.f32 1.442695, %v71_v4  ;;  %v75_v7 = vmul.f32 1.442695, %v72_v5 }
  0x2c   :  { %p186_p5 = por %p185_p4, %p184_p3 }
  0x2d   :  { %127 = vpow2.f32 %v73_v6 }
  0x2e   :  { %129 = vpow2.f32 %v75_v7  ;;  %p187_p6 = pnand %p186_p5, %p180_p2 }
  0x37   :  { %v128_v8 = vpop.eup %127 }
  0x38   :  { %v130_v9 = vpop.eup %129  ;;  %v77_v10 = vadd.f32 1.0, %v128_v8  ;;  %v80_v13 = vmul.f32 -0.5, %v128_v8  ;;  %v83_v18 = vand.u32 2147483647, %v128_v8 }
  0x39   :  { %v86_v11 = vadd.f32 1.0, %v130_v9  ;;  %v89_v15 = vmul.f32 -0.5, %v130_v9  ;;  %v92_v22 = vand.u32 2147483647, %v130_v9 }
  0x3a   :  { %131 = vlog2.f32 %v77_v10  ;;  %v81_v16 = vadd.f32 1.0, %v80_v13  ;;  %vm84_vm2 = vcmp.lt.f32.partialorder %v83_v18, 0.0004427343 }
  0x3b   :  { %133 = vlog2.f32 %v86_v11  ;;  %v90_v19 = vadd.f32 1.0, %v89_v15  ;;  %vm93_vm3 = vcmp.lt.f32.partialorder %v92_v22, 0.0004427343 }
  0x3c   :  { %v82_v24 = vmul.f32 %v128_v8, %v81_v16 }
  0x3d   :  { %v91_v27 = vmul.f32 %v130_v9, %v90_v19 }
  0x44   :  { %v132_v25 = vpop.eup %131 }
  0x45   :  { %v134_v28 = vpop.eup %133  ;;  %v79_v30 = vmul.f32 0.6931472, %v132_v25 }
  0x46   :  { %v88_v31 = vmul.f32 0.6931472, %v134_v28 }
  0x47   :  { %v85_v32 = vsel %vm84_vm2, %v82_v24, %v79_v30 }
  0x48   :  { %v94_v33 = vsel %vm93_vm3, %v91_v27, %v88_v31  ;;  %v95_v34 = vadd.f32 %v85_v32, %v67_v26 }
  0x49   :  { %v96_v35 = vadd.f32 %v94_v33, %v68_v29 }
  0x4b   :  { %v98_v36 = vadd.f32 %v96_v35, %v95_v34 }
  0x4d   :  { %105 = vst [vmem:[#allocation8] sm:$0xff] %v98_v36 }
  0x4e   :  { %190 = shalt.err (!%p187_p6)
}
  0x4f   :  { %s191_s10 = scalar_lea.hbm %s265_s2, 128 }
  0x50   :  { %p192_p7 = scmp.ne.s32.totalorder %s265_s2, %s191_s10  ;;  %p195_p8 = scmp.lt.u32.totalorder %s191_s10, %s265_s2 }
  0x52   :  { %p197_p9 = pnand %p195_p8, %p192_p7 }
  0x54   :  { %200 = shalt.err (!%p197_p9)
}
  0x55   :  { %115 = dma.vmem_to_hbm [thread:$0]  %s113_s6, 128, %s265_s2, [#allocation5]  }
  0x56   :  { %205 = dma.done.wait [#allocation5], 128  }
  0x57   :  { %206 = vsyncadd [#allocation5], 4294967168 }
  0x58   :  { %119 = vsyncpa [#allocation4], 1 }
  0x59   :  { %120 = vsyncpa [#allocation7], 1 }
  0x5a   :  { %121 = vsyncpa [#allocation5], 1 }

</bundles_post_ra>
